<compile_context>
chip_gen: v5e
topology: v5e:2x2
jax: 0.10.0
libtpu: 0.0.40
codegen_flags: <defaults>
</compile_context>

<pallas_src>
import jax
import jax.numpy as jnp
from jax.experimental import pallas as pl
from jax.experimental.pallas import tpu as pltpu

_LANE = 128
_SUBLANE = 8


def _round_up(x, m):
    return ((x + m - 1) // m) * m


def _cdiv(a, b):
    return -(-a // b)


def _peac_diayn_kernel(obs_ref,
                       w1_ref, b1_ref,
                       w2_ref, b2_ref,
                       wh_ref, bh_ref,
                       out_ref):
    # Cast obs to the MXU operand dtype in-kernel (no wrapper-side copy).
    obs = obs_ref[...].astype(w1_ref.dtype)

    # feat_net: Linear -> ReLU -> Linear -> ReLU  (MXU matmuls, f32 accum)
    h1 = jnp.dot(obs, w1_ref[...], preferred_element_type=jnp.float32) + b1_ref[...]
    h1 = jnp.maximum(h1, 0.0)

    h2 = jnp.dot(h1.astype(w2_ref.dtype), w2_ref[...],
                 preferred_element_type=jnp.float32) + b2_ref[...]
    feat = jnp.maximum(h2, 0.0)

    # fused heads: [task_pred || skill_pred] -> one lane-dense matmul + store
    out = jnp.dot(feat.astype(wh_ref.dtype), wh_ref[...],
                  preferred_element_type=jnp.float32) + bh_ref[...]
    out_ref[...] = out.astype(out_ref.dtype)


def prepare_params(params, *, mxu_dtype=jnp.bfloat16):
    """One-time parameter preparation: fuse heads, lane-pad, cast MXU operands.

    Call once; reuse the result across forward calls (RL rollouts etc.).
    """
    obs_dim, hidden_dim = params["w1"].shape
    context_dim = params["wt"].shape[1]
    skill_dim = params["ws"].shape[1]
    head_dim = context_dim + skill_dim

    hid_p = _round_up(hidden_dim, _LANE)
    out_p = _round_up(head_dim, _LANE)

    def pad2(a, rows, cols):
        return jnp.pad(a, ((0, rows - a.shape[0]), (0, cols - a.shape[1])))

    # Fuse the two prediction heads into one wider weight/bias.
    wh = jnp.concatenate([params["wt"], params["ws"]], axis=1)   # (hid, ctx+skill)
    bh = jnp.concatenate([params["bt"], params["bs"]], axis=1)   # (1,  ctx+skill)

    prepared = dict(
        # w1 keeps its real contraction dim (obs_dim); only the output dim is
        # lane-padded.  Zero-padded columns -> zero activations after ReLU.
        w1=pad2(params["w1"], obs_dim, hid_p).astype(mxu_dtype),
        w2=pad2(params["w2"], hid_p, hid_p).astype(mxu_dtype),
        wh=pad2(wh, hid_p, out_p).astype(mxu_dtype),
        # Biases stay f32: they add into the f32 accumulator (v5e-safe).
        b1=pad2(params["b1"], 1, hid_p).astype(jnp.float32),
        b2=pad2(params["b2"], 1, hid_p).astype(jnp.float32),
        bh=pad2(bh, 1, out_p).astype(jnp.float32),
        dims=dict(obs_dim=obs_dim, hidden_dim=hidden_dim,
                  context_dim=context_dim, skill_dim=skill_dim,
                  hid_p=hid_p, out_p=out_p),
    )
    return prepared


def peac_diayn_forward(obs, prepared, *, block_batch=4096,
                       out_dtype=jnp.float32, min_grid_steps=2):
    """obs: (B, obs_dim) f32.  prepared: output of prepare_params().

    Returns (task_pred, skill_pred) with shapes (B, context_dim), (B, skill_dim).
    """
    B, obs_dim = obs.shape
    d = prepared["dims"]
    assert obs_dim == d["obs_dim"], "obs feature dim mismatch with params"
    hid_p, out_p = d["hid_p"], d["out_p"]
    context_dim, skill_dim = d["context_dim"], d["skill_dim"]
    head_dim = context_dim + skill_dim

    # Balanced batch tiling: waste per tile bounded by <8 rows; at least
    # `min_grid_steps` grid steps (when B permits) so both v7x TCs get work.
    num_tiles = max(_cdiv(B, block_batch), 1)
    if num_tiles < min_grid_steps and B >= min_grid_steps * _SUBLANE:
        num_tiles = min_grid_steps
    TB = _round_up(_cdiv(B, num_tiles), _SUBLANE)
    B_p = num_tiles * TB

    # Only a small batch-row pad when B doesn't divide; feature dim untouched.
    obs_in = obs if B_p == B else jnp.pad(obs, ((0, B_p - B), (0, 0)))

    grid = (num_tiles,)

    def row_spec(shape):
        return pl.BlockSpec(shape, lambda i: (i, 0))

    def const_spec(shape):
        # Constant block index => weights/biases stay resident in VMEM
        # across batch tiles (no re-DMA).
        return pl.BlockSpec(shape, lambda i: (0, 0))

    out = pl.pallas_call(
        _peac_diayn_kernel,
        grid=grid,
        in_specs=[
            # obs block: full (unpadded) feature dim is legal as last block dim.
            row_spec((TB, obs_dim)),
            const_spec((obs_dim, hid_p)), const_spec((1, hid_p)),
            const_spec((hid_p, hid_p)), const_spec((1, hid_p)),
            const_spec((hid_p, out_p)), const_spec((1, out_p)),
        ],
        out_specs=row_spec((TB, out_p)),
        out_shape=jax.ShapeDtypeStruct((B_p, out_p), out_dtype),
        compiler_params=pltpu.CompilerParams(
            dimension_semantics=("parallel",)),
    )(obs_in, prepared["w1"], prepared["b1"], prepared["w2"], prepared["b2"],
      prepared["wh"], prepared["bh"])

    task_pred = out[:B, :context_dim]
    skill_pred = out[:B, context_dim:head_dim]
    return task_pred, skill_pred


def init_params(key, obs_dim, skill_dim, context_dim, hidden_dim):
    """Deterministic synthetic init (scaled normal; biases zero)."""
    ks = jax.random.split(key, 4)

    def lin(k, fan_in, fan_out):
        scale = 1.0 / jnp.sqrt(jnp.float32(fan_in))
        w = scale * jax.random.normal(k, (fan_in, fan_out), dtype=jnp.float32)
        b = jnp.zeros((1, fan_out), dtype=jnp.float32)
        return w, b

    w1, b1 = lin(ks[0], obs_dim, hidden_dim)
    w2, b2 = lin(ks[1], hidden_dim, hidden_dim)
    wt, bt = lin(ks[2], hidden_dim, context_dim)
    ws, bs = lin(ks[3], hidden_dim, skill_dim)
    return dict(w1=w1, b1=b1, w2=w2, b2=b2, wt=wt, bt=bt, ws=ws, bs=bs)


def reference_forward(obs, p):
    """Pure-JAX reference for correctness check."""
    h = jnp.maximum(obs @ p["w1"] + p["b1"], 0.0)
    feat = jnp.maximum(h @ p["w2"] + p["b2"], 0.0)
    task = feat @ p["wt"] + p["bt"]
    skill = feat @ p["ws"] + p["bs"]
    return task, skill


if __name__ == "__main__":
    obs_dim, skill_dim, context_dim, hidden_dim = 24, 16, 8, 32
    batch = 8

    key = jax.random.PRNGKey(0)
    k_obs, k_par, k_big = jax.random.split(key, 3)
    obs = jax.random.normal(k_obs, (batch, obs_dim), dtype=jnp.float32)
    params = init_params(k_par, obs_dim, skill_dim, context_dim, hidden_dim)
    task_ref, skill_ref = reference_forward(obs, params)

    # Exactness check with f32 MXU operands (tight tolerance).
    prep_f32 = prepare_params(params, mxu_dtype=jnp.float32)
    task_pred, skill_pred = peac_diayn_forward(obs, prep_f32)
    jax.block_until_ready((task_pred, skill_pred))
    assert task_pred.shape == (batch, context_dim)
    assert skill_pred.shape == (batch, skill_dim)
    assert jnp.allclose(task_pred, task_ref, atol=1e-5, rtol=1e-5)
    assert jnp.allclose(skill_pred, skill_ref, atol=1e-5, rtol=1e-5)

    # Default (bf16 MXU operands, f32 accumulate): looser tolerance.
    prep_bf16 = prepare_params(params)  # mxu_dtype=bfloat16 default
    task_bf, skill_bf = peac_diayn_forward(obs, prep_bf16)
    jax.block_until_ready((task_bf, skill_bf))
    assert jnp.allclose(task_bf, task_ref, atol=5e-2, rtol=5e-2)
    assert jnp.allclose(skill_bf, skill_ref, atol=5e-2, rtol=5e-2)

    # Multi-tile / batch-padding path (>= 2 grid steps, non-divisible batch).
    big_batch = 260
    obs_big = jax.random.normal(k_big, (big_batch, obs_dim), dtype=jnp.float32)
    t_big, s_big = peac_diayn_forward(obs_big, prep_f32)
    jax.block_until_ready((t_big, s_big))
    t_big_ref, s_big_ref = reference_forward(obs_big, params)
    assert t_big.shape == (big_batch, context_dim)
    assert s_big.shape == (big_batch, skill_dim)
    assert jnp.allclose(t_big, t_big_ref, atol=1e-5, rtol=1e-5)
    assert jnp.allclose(s_big, s_big_ref, atol=1e-5, rtol=1e-5)

    print("KERNEL_OK")
</pallas_src>

<mosaic_0001>
module attributes {stable_mosaic.version = 11 : i64} {
  func.func @_peac_diayn_kernel(%arg0: i32, %arg1: memref<8x24xf32, #tpu.memory_space<vmem>>, %arg2: memref<24x128xf32, #tpu.memory_space<vmem>>, %arg3: memref<1x128xf32, #tpu.memory_space<vmem>>, %arg4: memref<128x128xf32, #tpu.memory_space<vmem>>, %arg5: memref<1x128xf32, #tpu.memory_space<vmem>>, %arg6: memref<128x128xf32, #tpu.memory_space<vmem>>, %arg7: memref<1x128xf32, #tpu.memory_space<vmem>>, %arg8: memref<8x128xf32, #tpu.memory_space<vmem>>) attributes {dimension_semantics = [#tpu.dimension_semantics<parallel>], iteration_bounds = array<i64: 1>, scalar_prefetch = 0 : i64, scratch_operands = 0 : i64, tpu.core_type = #tpu.core_type<tc>, window_params = [{transform_indices = @transform_0, window_bounds = array<i64: 8, 24>}, {pipeline_mode = #tpu.pipeline_mode<synchronous>, transform_indices = @transform_1, window_bounds = array<i64: 24, 128>}, {pipeline_mode = #tpu.pipeline_mode<synchronous>, transform_indices = @transform_2, window_bounds = array<i64: 1, 128>}, {pipeline_mode = #tpu.pipeline_mode<synchronous>, transform_indices = @transform_3, window_bounds = array<i64: 128, 128>}, {pipeline_mode = #tpu.pipeline_mode<synchronous>, transform_indices = @transform_4, window_bounds = array<i64: 1, 128>}, {pipeline_mode = #tpu.pipeline_mode<synchronous>, transform_indices = @transform_5, window_bounds = array<i64: 128, 128>}, {pipeline_mode = #tpu.pipeline_mode<synchronous>, transform_indices = @transform_6, window_bounds = array<i64: 1, 128>}, {transform_indices = @transform_7, window_bounds = array<i64: 8, 128>}]} {
    %c0 = arith.constant 0 : index
    %c0_0 = arith.constant 0 : index
    %0 = vector.load %arg1[%c0, %c0_0] : memref<8x24xf32, #tpu.memory_space<vmem>>, vector<8x24xf32>
    %c0_1 = arith.constant 0 : index
    %c0_2 = arith.constant 0 : index
    %1 = vector.load %arg2[%c0_1, %c0_2] : memref<24x128xf32, #tpu.memory_space<vmem>>, vector<24x128xf32>
    %cst = arith.constant dense<0.000000e+00> : vector<8x128xf32>
    %2 = tpu.matmul %0, %1, %cst {dimension_numbers = #tpu.dot_dimension_numbers<[1], [0], [0], [1], [0, 0, 1, 1], [], []>} : vector<8x24xf32>, vector<24x128xf32>, vector<8x128xf32> -> vector<8x128xf32>
    %c0_3 = arith.constant 0 : index
    %c0_4 = arith.constant 0 : index
    %3 = vector.load %arg3[%c0_3, %c0_4] : memref<1x128xf32, #tpu.memory_space<vmem>>, vector<1x128xf32>
    %4 = vector.broadcast %3 : vector<1x128xf32> to vector<8x128xf32>
    %5 = arith.addf %2, %4 : vector<8x128xf32>
    %cst_5 = arith.constant 0.000000e+00 : f32
    %6 = vector.broadcast %cst_5 : f32 to vector<8x128xf32>
    %7 = arith.maximumf %5, %6 : vector<8x128xf32>
    %c0_6 = arith.constant 0 : index
    %c0_7 = arith.constant 0 : index
    %8 = vector.load %arg4[%c0_6, %c0_7] : memref<128x128xf32, #tpu.memory_space<vmem>>, vector<128x128xf32>
    %cst_8 = arith.constant dense<0.000000e+00> : vector<8x128xf32>
    %9 = tpu.matmul %7, %8, %cst_8 {dimension_numbers = #tpu.dot_dimension_numbers<[1], [0], [0], [1], [0, 0, 1, 1], [], []>} : vector<8x128xf32>, vector<128x128xf32>, vector<8x128xf32> -> vector<8x128xf32>
    %c0_9 = arith.constant 0 : index
    %c0_10 = arith.constant 0 : index
    %10 = vector.load %arg5[%c0_9, %c0_10] : memref<1x128xf32, #tpu.memory_space<vmem>>, vector<1x128xf32>
    %11 = vector.broadcast %10 : vector<1x128xf32> to vector<8x128xf32>
    %12 = arith.addf %9, %11 : vector<8x128xf32>
    %cst_11 = arith.constant 0.000000e+00 : f32
    %13 = vector.broadcast %cst_11 : f32 to vector<8x128xf32>
    %14 = arith.maximumf %12, %13 : vector<8x128xf32>
    %c0_12 = arith.constant 0 : index
    %c0_13 = arith.constant 0 : index
    %15 = vector.load %arg6[%c0_12, %c0_13] : memref<128x128xf32, #tpu.memory_space<vmem>>, vector<128x128xf32>
    %cst_14 = arith.constant dense<0.000000e+00> : vector<8x128xf32>
    %16 = tpu.matmul %14, %15, %cst_14 {dimension_numbers = #tpu.dot_dimension_numbers<[1], [0], [0], [1], [0, 0, 1, 1], [], []>} : vector<8x128xf32>, vector<128x128xf32>, vector<8x128xf32> -> vector<8x128xf32>
    %c0_15 = arith.constant 0 : index
    %c0_16 = arith.constant 0 : index
    %17 = vector.load %arg7[%c0_15, %c0_16] : memref<1x128xf32, #tpu.memory_space<vmem>>, vector<1x128xf32>
    %18 = vector.broadcast %17 : vector<1x128xf32> to vector<8x128xf32>
    %19 = arith.addf %16, %18 : vector<8x128xf32>
    %c0_17 = arith.constant 0 : index
    %c0_18 = arith.constant 0 : index
    %20 = vector.load %arg8[%c0_17, %c0_18] : memref<8x128xf32, #tpu.memory_space<vmem>>, vector<8x128xf32>
    tpu.vector_store %arg8[%c0_17, %c0_18], %19 {strides = array<i32>} : memref<8x128xf32, #tpu.memory_space<vmem>>, vector<8x128xf32>,
    return
  }
  func.func @transform_0(%arg0: i32) -> (i32, i32) {
    %c0_i32 = arith.constant 0 : i32
    %c0_i32_0 = arith.constant 0 : i32
    return %arg0, %c0_i32 : i32, i32
  }
  func.func @transform_1(%arg0: i32) -> (i32, i32) {
    %c0_i32 = arith.constant 0 : i32
    %c0_i32_0 = arith.constant 0 : i32
    %c0_i32_1 = arith.constant 0 : i32
    return %c0_i32, %c0_i32_0 : i32, i32
  }
  func.func @transform_2(%arg0: i32) -> (i32, i32) {
    %c0_i32 = arith.constant 0 : i32
    %c0_i32_0 = arith.constant 0 : i32
    %c0_i32_1 = arith.constant 0 : i32
    return %c0_i32, %c0_i32_0 : i32, i32
  }
  func.func @transform_3(%arg0: i32) -> (i32, i32) {
    %c0_i32 = arith.constant 0 : i32
    %c0_i32_0 = arith.constant 0 : i32
    %c0_i32_1 = arith.constant 0 : i32
    return %c0_i32, %c0_i32_0 : i32, i32
  }
  func.func @transform_4(%arg0: i32) -> (i32, i32) {
    %c0_i32 = arith.constant 0 : i32
    %c0_i32_0 = arith.constant 0 : i32
    %c0_i32_1 = arith.constant 0 : i32
    return %c0_i32, %c0_i32_0 : i32, i32
  }
  func.func @transform_5(%arg0: i32) -> (i32, i32) {
    %c0_i32 = arith.constant 0 : i32
    %c0_i32_0 = arith.constant 0 : i32
    %c0_i32_1 = arith.constant 0 : i32
    return %c0_i32, %c0_i32_0 : i32, i32
  }
  func.func @transform_6(%arg0: i32) -> (i32, i32) {
    %c0_i32 = arith.constant 0 : i32
    %c0_i32_0 = arith.constant 0 : i32
    %c0_i32_1 = arith.constant 0 : i32
    return %c0_i32, %c0_i32_0 : i32, i32
  }
  func.func @transform_7(%arg0: i32) -> (i32, i32) {
    %c0_i32 = arith.constant 0 : i32
    %c0_i32_0 = arith.constant 0 : i32
    return %arg0, %c0_i32 : i32, i32
  }
}

</mosaic_0001>

<bundles_post_ra>
// kernel: tpu_custom_call.1
= control target key start
LH: loop header
LB: loop body
LE: loop exit
PB: predicated region body
PF: predicated region fallthrough
CT: control target
= control target key end

     0   :  { %12 = vsyncpa [#allocation3], 0  ;;  %s432_s0 = inlined_call_operand.hbm [shape: f32[8,24], index: 0, kind: input, shape index: {}]   ;;  %s433_s1 = inlined_call_operand.hbm [shape: f32[24,128], index: 1, kind: input, shape index: {}]   ;;  %s434_s2 = inlined_call_operand.vmem [shape: f32[1,128], index: 2, kind: input, shape index: {}]   ;;  %s435_s3 = inlined_call_operand.hbm [shape: f32[128,128], index: 3, kind: input, shape index: {}]   ;;  %s436_s4 = inlined_call_operand.vmem [shape: f32[1,128], index: 4, kind: input, shape index: {}]   ;;  %s437_s5 = inlined_call_operand.hbm [shape: f32[128,128], index: 5, kind: input, shape index: {}]   ;;  %s438_s6 = inlined_call_operand.vmem [shape: f32[1,128], index: 6, kind: input, shape index: {}]   ;;  %s439_s7 = inlined_call_operand.hbm [shape: f32[8,128], index: 7, kind: output, shape index: {}]  }
   0x1   :  { %13 = vsyncpa [#allocation6], 0 }
   0x2   :  { %14 = vsyncpa [#allocation9], 0  ;;  %s31_s26 = sshll.u32 %s433_s1, 4  ;;  %s32_s26 = int_to_ptr.hbm [resolvable:$true] %s31_s26 }
   0x3   :  { %15 = vsyncpa [#allocation4], 0  ;;  %s361_s27 = smov [#allocation5]   ;;  %s21_s8 = sshll.u32 %s432_s0, 4  ;;  %s22_s8 = int_to_ptr.hbm [resolvable:$true] %s21_s8 }
   0x4   :  { %s33_s28 = sshll.u32 %s361_s27, 4  ;;  %s362_s9 = smov 128   ;;  %s34_s28 = int_to_ptr.vmem [resolvable:$true] %s33_s28 }
   0x5   :  { %s363_s10 = smov 8   ;;  %s364_s11 = smov [#allocation2]  }
   0x6   :  { %39 = dma.hbm_to_vmem [thread:$0]  %s32_s26, 384, %s34_s28, [#allocation6], %s362_s9, %s362_s9, %s363_s10  }
   0x7   :  { %s23_s12 = sshll.u32 %s364_s11, 4  ;;  %s46_s15 = sshll.u32 %s435_s3, 4  ;;  %s24_s12 = int_to_ptr.vmem [resolvable:$true] %s23_s12  ;;  %s47_s15 = int_to_ptr.hbm [resolvable:$true] %s46_s15 }
   0x8   :  { %26 = dma.hbm_to_vmem [thread:$0]  %s22_s8, 128, %s24_s12, [#allocation3]  }
   0x9   :  { %s61_s17 = sshll.u32 %s437_s5, 4  ;;  %s365_s18 = smov [#allocation7]   ;;  %s62_s17 = int_to_ptr.hbm [resolvable:$true] %s61_s17 }
   0xa   :  { %s48_s19 = sshll.u32 %s365_s18, 4  ;;  %s366_s0 = smov [#allocation8]   ;;  %s49_s19 = int_to_ptr.vmem [resolvable:$true] %s48_s19 }
   0xb   :  { %54 = dma.hbm_to_vmem [thread:$0]  %s47_s15, 2048, %s49_s19, [#allocation6], %s362_s9, %s362_s9, %s363_s10  }
   0xc   :  { %s63_s20 = sshll.u32 %s366_s0, 4  ;;  %s64_s20 = int_to_ptr.vmem [resolvable:$true] %s63_s20 }
   0xd   :  { %69 = dma.hbm_to_vmem [thread:$0]  %s62_s17, 2048, %s64_s20, [#allocation9], %s362_s9, %s362_s9, %s363_s10  }
   0xe   :  { %353 = dma.done.wait [#allocation3], 128  }
   0xf   :  { %354 = vsyncadd [#allocation3], 4294967168 }
  0x10   :  { %355 = dma.done.wait [#allocation6], 2432  }
  0x11   :  { %356 = vsyncadd [#allocation6], 4294964864 }
  0x12   :  { %357 = dma.done.wait [#allocation9], 2048  }
  0x13   :  { %358 = vsyncadd [#allocation9], 4294965248  ;;  %v91_v0 = vld [vmem:[#allocation5 + $0x10] sm:$0xff]  ;;  %v90_v1 = vld [vmem:[#allocation5 + $0x8] sm:$0xff]  ;;  %vm96_vm0 = vcmask 195584   ;;  %s367_s24 = smov [#allocation10]  }
  0x14   :  { %113 = vmatpush.msra.mxu0 %v91_v0  ;;  %v136_v2 = vld [vmem:[#allocation7 + $0x78] sm:$0xff]  ;;  %v135_v3 = vld [vmem:[#allocation7 + $0x70] sm:$0xff]  ;;  %v89_v4 = vld [vmem:[#allocation5] sm:$0xff]  ;;  %s208_s25 = sshll.u32 %s367_s24, 4  ;;  %s210_s28 = sshll.u32 %s439_s7, 4  ;;  %s209_s25 = int_to_ptr.vmem [resolvable:$true] %s208_s25  ;;  %s211_s28 = int_to_ptr.hbm [resolvable:$true] %s210_s28 }
  0x15   :  { %141 = vmatpush.msra.mxu1 %v136_v2  ;;  %v88_v5 = vld [vmem:[#allocation2] sm:$0xff]  ;;  %v134_v6 = vld [vmem:[#allocation7 + $0x68] sm:$0xff]  ;;  %v132_v8 = vld [vmem:[#allocation7 + $0x58] sm:$0xff] }
  0x16   :  { %114 = vmatpush.msra.mxu0 %v90_v1  ;;  %v133_v7 = vld [vmem:[#allocation7 + $0x60] sm:$0xff]  ;;  %v131_v9 = vld [vmem:[#allocation7 + $0x50] sm:$0xff]  ;;  %v130_v10 = vld [vmem:[#allocation7 + $0x48] sm:$0xff] }
  0x17   :  { %142 = vmatpush.msra.mxu1 %v135_v3  ;;  %v129_v11 = vld [vmem:[#allocation7 + $0x40] sm:$0xff]  ;;  %v128_v12 = vld [vmem:[#allocation7 + $0x38] sm:$0xff]  ;;  %v127_v13 = vld [vmem:[#allocation7 + $0x30] sm:$0xff] }
  0x18   :  { %115 = vmatpush.msra.mxu0 %v89_v4  ;;  %v126_v14 = vld [vmem:[#allocation7 + $0x28] sm:$0xff]  ;;  %v125_v15 = vld [vmem:[#allocation7 + $0x20] sm:$0xff]  ;;  %v124_v16 = vld [vmem:[#allocation7 + $0x18] sm:$0xff] }
  0x19   :  { %222 = vmatmul.msk.f32.vlgmr.msra.gmra.mxu0 %vm96_vm0, %v88_v5  ;;  %143 = vmatpush.msra.mxu1 %v134_v6  ;;  %v123_v17 = vld [vmem:[#allocation7 + $0x10] sm:$0xff]  ;;  %v122_v18 = vld [vmem:[#allocation7 + $0x8] sm:$0xff]  ;;  %v121_v19 = vld [vmem:[#allocation7] sm:$0xff] }
  0x1a   :  { %v177_v20 = vld [vmem:[#allocation8 + $0x78] sm:$0xff]  ;;  %v176_v21 = vld [vmem:[#allocation8 + $0x70] sm:$0xff]  ;;  %v175_v22 = vld [vmem:[#allocation8 + $0x68] sm:$0xff] }
  0x1b   :  { %144 = vmatpush.msra.mxu1 %v133_v7  ;;  %182 = vmatpush.msra.mxu2 %v177_v20  ;;  %v174_v23 = vld [vmem:[#allocation8 + $0x60] sm:$0xff]  ;;  %v173_v24 = vld [vmem:[#allocation8 + $0x58] sm:$0xff]  ;;  %v172_v25 = vld [vmem:[#allocation8 + $0x50] sm:$0xff] }
  0x1c   :  { %v171_v26 = vld [vmem:[#allocation8 + $0x48] sm:$0xff]  ;;  %v170_v27 = vld [vmem:[#allocation8 + $0x40] sm:$0xff]  ;;  %v169_v28 = vld [vmem:[#allocation8 + $0x38] sm:$0xff] }
  0x1d   :  { %145 = vmatpush.msra.mxu1 %v132_v8  ;;  %183 = vmatpush.msra.mxu2 %v176_v21  ;;  %v168_v29 = vld [vmem:[#allocation8 + $0x30] sm:$0xff]  ;;  %v167_v30 = vld [vmem:[#allocation8 + $0x28] sm:$0xff]  ;;  %v166_v31 = vld [vmem:[#allocation8 + $0x20] sm:$0xff] }
  0x1e   :  { %v165_v32 = vld [vmem:[#allocation8 + $0x18] sm:$0xff]  ;;  %v230_v33 = vld [vmem:[%s434_s2] ss:$0 sm:$0xff]  ;;  %v164_v37 = vld [vmem:[#allocation8 + $0x10] sm:$0xff] }
  0x1f   :  { %146 = vmatpush.msra.mxu1 %v131_v9  ;;  %184 = vmatpush.msra.mxu2 %v175_v22  ;;  %v163_v38 = vld [vmem:[#allocation8 + $0x8] sm:$0xff]  ;;  %v162_v39 = vld [vmem:[#allocation8] sm:$0xff] }
  0x20   :  { %v231_v40 = vld [vmem:[%s436_s4] ss:$0 sm:$0xff] }
  0x21   :  { %147 = vmatpush.msra.mxu1 %v130_v10  ;;  %185 = vmatpush.msra.mxu2 %v174_v23  ;;  %v232_v44 = vld [vmem:[%s438_s6] ss:$0 sm:$0xff] }
  0x23   :  { %148 = vmatpush.msra.mxu1 %v129_v11  ;;  %186 = vmatpush.msra.mxu2 %v173_v24 }
  0x25   :  { %149 = vmatpush.msra.mxu1 %v128_v12  ;;  %187 = vmatpush.msra.mxu2 %v172_v25 }
  0x27   :  { %150 = vmatpush.msra.mxu1 %v127_v13  ;;  %188 = vmatpush.msra.mxu2 %v171_v26 }
  0x29   :  { %151 = vmatpush.msra.mxu1 %v126_v14  ;;  %189 = vmatpush.msra.mxu2 %v170_v27 }
  0x2b   :  { %152 = vmatpush.msra.mxu1 %v125_v15  ;;  %190 = vmatpush.msra.mxu2 %v169_v28 }
  0x2d   :  { %153 = vmatpush.msra.mxu1 %v124_v16  ;;  %191 = vmatpush.msra.mxu2 %v168_v29 }
  0x2f   :  { %154 = vmatpush.msra.mxu1 %v123_v17  ;;  %192 = vmatpush.msra.mxu2 %v167_v30 }
  0x31   :  { %155 = vmatpush.msra.mxu1 %v122_v18  ;;  %193 = vmatpush.msra.mxu2 %v166_v31 }
  0x33   :  { %156 = vmatpush.msra.mxu1 %v121_v19  ;;  %194 = vmatpush.msra.mxu2 %v165_v32 }
  0x35   :  { %195 = vmatpush.msra.mxu2 %v164_v37 }
  0x37   :  { %196 = vmatpush.msra.mxu2 %v163_v38 }
  0x39   :  { %197 = vmatpush.msra.mxu2 %v162_v39 }
  0x96   :  { %v117_v34 = vpop.f32.mrf.mxu0 }
  0x97   :  { %v118_v35 = vadd.f32 %v230_v33, %v117_v34 }
  0x99   :  { %v120_v36 = vmax.f32 %v118_v35, 0.0 }
  0x9b   :  { %157 = vmatmul.f32.vlgmr.msra.gmra.mxu1 %v120_v36 }
 0x118   :  { %v158_v41 = vpop.f32.mrf.mxu1 }
 0x119   :  { %v159_v42 = vadd.f32 %v231_v40, %v158_v41 }
 0x11b   :  { %v161_v43 = vmax.f32 %v159_v42, 0.0 }
 0x11d   :  { %198 = vmatmul.f32.vlgmr.msra.gmra.mxu2 %v161_v43 }
 0x1a0   :  { %v199_v45 = vpop.f32.mrf.mxu2 }
 0x1a1   :  { %v200_v46 = vadd.f32 %v232_v44, %v199_v45 }
 0x1a3   :  { %202 = vst [vmem:[#allocation10] sm:$0xff] %v200_v46 }
 0x1a4   :  { %213 = dma.vmem_to_hbm [thread:$0]  %s209_s25, 128, %s211_s28, [#allocation4]  }
 0x1a5   :  { %359 = dma.done.wait [#allocation4], 128  }
 0x1a6   :  { %360 = vsyncadd [#allocation4], 4294967168 }
 0x1a7   :  { %218 = vsyncpa [#allocation3], 1 }
 0x1a8   :  { %219 = vsyncpa [#allocation6], 1 }
 0x1a9   :  { %220 = vsyncpa [#allocation9], 1 }
 0x1aa   :  { %221 = vsyncpa [#allocation4], 1 }

</bundles_post_ra>
